<compile_context>
chip_gen: v7x
topology: tpu7x:2x2x1
jax: 0.10.0
libtpu: 0.0.40
codegen_flags: <defaults>
</compile_context>

<pallas_src>
import functools

import jax
import jax.numpy as jnp
from jax.experimental import pallas as pl
from jax.experimental.pallas import tpu as pltpu

LANE = 128          # lane width: hidden-32 and action dims are padded to this for the MXU
MAX_TB = 4096       # max batch-tile rows per grid step
MIN_SPLIT_B = 512   # above this batch, force >=2 grid steps (v7x dual-TC utilization)


def qnetwork_kernel(x_ref, w1_ref, b1_ref, w2_ref, b2_ref, w3_ref, b3_ref, o_ref):
    wdt = w1_ref.dtype                      # f32 or bf16 weights; accumulation is always f32
    x = x_ref[...].astype(wdt)
    # fc1 + ReLU  (h1 lane-dense: (TB, 128); padded columns are exactly 0 after ReLU)
    h1 = jnp.dot(x, w1_ref[...], preferred_element_type=jnp.float32) + b1_ref[...]
    h1 = jnp.maximum(h1, 0.0)
    # fc2 + ReLU  (zero-padded h1 columns hit zero-padded w2 rows -> contribute nothing)
    h2 = jnp.dot(h1.astype(wdt), w2_ref[...], preferred_element_type=jnp.float32) + b2_ref[...]
    h2 = jnp.maximum(h2, 0.0)
    # fc3 (no activation); matmul at padded width, but store only the real action columns.
    h3 = jnp.dot(h2.astype(wdt), w3_ref[...], preferred_element_type=jnp.float32) + b3_ref[...]
    o_ref[...] = h3[:, : o_ref.shape[1]]


def _round_up(n, m):
    return ((n + m - 1) // m) * m


def _pad2d(a, rows, cols):
    r, c = a.shape
    if r == rows and c == cols:
        return a
    return jnp.pad(a, ((0, rows - r), (0, cols - c)))


def pad_params(params, weights_dtype=jnp.float32):
    """Pad weights/biases to lane-dense shapes ONCE (hoisted out of the forward path).
    Weights optionally cast to bf16 for the MXU; biases stay f32 (added post f32-accumulate)."""
    w1, b1, w2, b2, w3, b3 = (params[k] for k in ("w1", "b1", "w2", "b2", "w3", "b3"))
    S, H1 = w1.shape
    H2 = w2.shape[1]
    A = w3.shape[1]
    H1p = _round_up(H1, LANE)   # 128
    H2p = _round_up(H2, LANE)   # 256
    Ap = _round_up(A, LANE)     # 128
    return {
        "w1": _pad2d(w1, S, H1p).astype(weights_dtype),
        "b1": _pad2d(b1, 1, H1p).astype(jnp.float32),
        "w2": _pad2d(w2, H1p, H2p).astype(weights_dtype),
        "b2": _pad2d(b2, 1, H2p).astype(jnp.float32),
        "w3": _pad2d(w3, H2p, Ap).astype(weights_dtype),
        "b3": _pad2d(b3, 1, Ap).astype(jnp.float32),
    }


@functools.partial(jax.jit, static_argnames=("action_size",))
def qnetwork_forward(x, padded_params, action_size):
    """x: (B, state_size) float32; padded_params: output of pad_params(); action_size: int."""
    w1, b1, w2, b2, w3, b3 = (
        padded_params[k] for k in ("w1", "b1", "w2", "b2", "w3", "b3")
    )
    B, S = x.shape
    H1p = w1.shape[1]
    H2p = w2.shape[1]
    Ap = w3.shape[1]
    A = action_size

    # Batch tile: sized from B so padding is near zero; >=2 grid steps for large batches so
    # the "parallel" grid axis can be sharded across v7x's two TensorCores.
    nsteps = max(pl.cdiv(B, MAX_TB), 2 if B >= MIN_SPLIT_B else 1)
    TB = _round_up(pl.cdiv(B, nsteps), 8)
    Bp = _round_up(B, TB)

    x_p = x if Bp == B else jnp.pad(x, ((0, Bp - B), (0, 0)))

    resident = lambda a: pl.BlockSpec(a.shape, lambda i: (0, 0))  # weights stay in VMEM

    wdt_bytes = jnp.dtype(w1.dtype).itemsize
    flops = 2 * Bp * (S * H1p + H1p * H2p + H2p * Ap)
    bytes_accessed = (
        4 * Bp * S                                   # x read
        + 4 * Bp * A                                 # narrowed output write
        + wdt_bytes * (S * H1p + H1p * H2p + H2p * Ap)   # weights
        + 4 * (H1p + H2p + Ap)                       # biases
    )

    out = pl.pallas_call(
        qnetwork_kernel,
        out_shape=jax.ShapeDtypeStruct((Bp, A), jnp.float32),
        grid=(Bp // TB,),
        in_specs=[
            pl.BlockSpec((TB, S), lambda i: (i, 0)),   # x: streamed over batch
            resident(w1), resident(b1),
            resident(w2), resident(b2),
            resident(w3), resident(b3),
        ],
        out_specs=pl.BlockSpec((TB, A), lambda i: (i, 0)),
        compiler_params=pltpu.CompilerParams(
            dimension_semantics=("parallel",),
        ),
        cost_estimate=pl.CostEstimate(
            flops=flops, transcendentals=0, bytes_accessed=bytes_accessed
        ),
    )(x_p, w1, b1, w2, b2, w3, b3)

    return out if Bp == B else out[:B]


def init_params(key, state_size, action_size):
    """Deterministic init mimicking PyTorch nn.Linear default:
    U(-1/sqrt(fan_in), 1/sqrt(fan_in)) for both weight and bias.
    Weights stored as (in_features, out_features); biases as (1, out_features)."""
    ks = jax.random.split(key, 6)

    def linear(kw, kb, fan_in, fan_out):
        bound = 1.0 / jnp.sqrt(float(fan_in))
        w = jax.random.uniform(kw, (fan_in, fan_out), jnp.float32, -bound, bound)
        b = jax.random.uniform(kb, (1, fan_out), jnp.float32, -bound, bound)
        return w, b

    w1, b1 = linear(ks[0], ks[1], state_size, 32)
    w2, b2 = linear(ks[2], ks[3], 32, 256)
    w3, b3 = linear(ks[4], ks[5], 256, action_size)
    return {"w1": w1, "b1": b1, "w2": w2, "b2": b2, "w3": w3, "b3": b3}


def qnetwork_ref(x, p):
    h1 = jnp.maximum(x @ p["w1"] + p["b1"], 0.0)
    h2 = jnp.maximum(h1 @ p["w2"] + p["b2"], 0.0)
    return h2 @ p["w3"] + p["b3"]


if __name__ == "__main__":
    # LunarLander-v2: observation dim = 8 (state_size), discrete actions = 4 (action_size).
    state_size, action_size = 8, 4
    batch = 2

    key = jax.random.PRNGKey(0)
    k_params, k_x = jax.random.split(key)
    params = init_params(k_params, state_size, action_size)

    # Pad/lay out the weights ONCE; every forward reuses them (DQN inner-loop pattern).
    pparams = jax.tree_util.tree_map(jax.block_until_ready, pad_params(params))

    x = jax.random.normal(k_x, (batch, state_size), jnp.float32)
    out = jax.block_until_ready(qnetwork_forward(x, pparams, action_size))
    ref = qnetwork_ref(x, params)
    assert out.shape == (batch, action_size)
    assert jnp.allclose(out, ref, atol=1e-5, rtol=1e-5)

    # Larger, multi-grid-step batch (also exercises the >=2-step / batch-pad path).
    xb = jax.random.normal(jax.random.PRNGKey(1), (3000, state_size), jnp.float32)
    outb = jax.block_until_ready(qnetwork_forward(xb, pparams, action_size))
    assert outb.shape == (3000, action_size)
    assert jnp.allclose(outb, qnetwork_ref(xb, params), atol=1e-4, rtol=1e-4)

    # Optional bf16-weight path (f32 accumulation) -- largest win on v5e's MXU.
    pparams_bf16 = pad_params(params, weights_dtype=jnp.bfloat16)
    outb16 = jax.block_until_ready(qnetwork_forward(xb, pparams_bf16, action_size))
    assert outb16.shape == (3000, action_size)
    assert jnp.allclose(outb16, qnetwork_ref(xb, params), atol=5e-2, rtol=5e-2)

    print("KERNEL_OK")
</pallas_src>

<mosaic_0001>
module attributes {stable_mosaic.version = 11 : i64} {
  func.func @qnetwork_kernel(%arg0: i32, %arg1: memref<8x8xf32, #tpu.memory_space<vmem>>, %arg2: memref<8x128xf32, #tpu.memory_space<vmem>>, %arg3: memref<1x128xf32, #tpu.memory_space<vmem>>, %arg4: memref<128x256xf32, #tpu.memory_space<vmem>>, %arg5: memref<1x256xf32, #tpu.memory_space<vmem>>, %arg6: memref<256x128xf32, #tpu.memory_space<vmem>>, %arg7: memref<1x128xf32, #tpu.memory_space<vmem>>, %arg8: memref<8x4xf32, #tpu.memory_space<vmem>>) attributes {dimension_semantics = [#tpu.dimension_semantics<parallel>], iteration_bounds = array<i64: 1>, scalar_prefetch = 0 : i64, scratch_operands = 0 : i64, tpu.core_type = #tpu.core_type<tc>, window_params = [{transform_indices = @transform_0, window_bounds = array<i64: 8, 8>}, {pipeline_mode = #tpu.pipeline_mode<synchronous>, transform_indices = @transform_1, window_bounds = array<i64: 8, 128>}, {pipeline_mode = #tpu.pipeline_mode<synchronous>, transform_indices = @transform_2, window_bounds = array<i64: 1, 128>}, {pipeline_mode = #tpu.pipeline_mode<synchronous>, transform_indices = @transform_3, window_bounds = array<i64: 128, 256>}, {pipeline_mode = #tpu.pipeline_mode<synchronous>, transform_indices = @transform_4, window_bounds = array<i64: 1, 256>}, {pipeline_mode = #tpu.pipeline_mode<synchronous>, transform_indices = @transform_5, window_bounds = array<i64: 256, 128>}, {pipeline_mode = #tpu.pipeline_mode<synchronous>, transform_indices = @transform_6, window_bounds = array<i64: 1, 128>}, {transform_indices = @transform_7, window_bounds = array<i64: 8, 4>}]} {
    %c0 = arith.constant 0 : index
    %c0_0 = arith.constant 0 : index
    %0 = vector.load %arg1[%c0, %c0_0] : memref<8x8xf32, #tpu.memory_space<vmem>>, vector<8x8xf32>
    %c0_1 = arith.constant 0 : index
    %c0_2 = arith.constant 0 : index
    %1 = vector.load %arg2[%c0_1, %c0_2] : memref<8x128xf32, #tpu.memory_space<vmem>>, vector<8x128xf32>
    %cst = arith.constant dense<0.000000e+00> : vector<8x128xf32>
    %2 = tpu.matmul %0, %1, %cst {dimension_numbers = #tpu.dot_dimension_numbers<[1], [0], [0], [1], [0, 0, 1, 1], [], []>} : vector<8x8xf32>, vector<8x128xf32>, vector<8x128xf32> -> vector<8x128xf32>
    %c0_3 = arith.constant 0 : index
    %c0_4 = arith.constant 0 : index
    %3 = vector.load %arg3[%c0_3, %c0_4] : memref<1x128xf32, #tpu.memory_space<vmem>>, vector<1x128xf32>
    %4 = vector.broadcast %3 : vector<1x128xf32> to vector<8x128xf32>
    %5 = arith.addf %2, %4 : vector<8x128xf32>
    %cst_5 = arith.constant 0.000000e+00 : f32
    %6 = vector.broadcast %cst_5 : f32 to vector<8x128xf32>
    %7 = arith.maximumf %5, %6 : vector<8x128xf32>
    %c0_6 = arith.constant 0 : index
    %c0_7 = arith.constant 0 : index
    %8 = vector.load %arg4[%c0_6, %c0_7] : memref<128x256xf32, #tpu.memory_space<vmem>>, vector<128x256xf32>
    %cst_8 = arith.constant dense<0.000000e+00> : vector<8x256xf32>
    %9 = tpu.matmul %7, %8, %cst_8 {dimension_numbers = #tpu.dot_dimension_numbers<[1], [0], [0], [1], [0, 0, 1, 1], [], []>} : vector<8x128xf32>, vector<128x256xf32>, vector<8x256xf32> -> vector<8x256xf32>
    %c0_9 = arith.constant 0 : index
    %c0_10 = arith.constant 0 : index
    %10 = vector.load %arg5[%c0_9, %c0_10] : memref<1x256xf32, #tpu.memory_space<vmem>>, vector<1x256xf32>
    %11 = vector.broadcast %10 : vector<1x256xf32> to vector<8x256xf32>
    %12 = arith.addf %9, %11 : vector<8x256xf32>
    %cst_11 = arith.constant 0.000000e+00 : f32
    %13 = vector.broadcast %cst_11 : f32 to vector<8x256xf32>
    %14 = arith.maximumf %12, %13 : vector<8x256xf32>
    %c0_12 = arith.constant 0 : index
    %c0_13 = arith.constant 0 : index
    %15 = vector.load %arg6[%c0_12, %c0_13] : memref<256x128xf32, #tpu.memory_space<vmem>>, vector<256x128xf32>
    %cst_14 = arith.constant dense<0.000000e+00> : vector<8x128xf32>
    %16 = tpu.matmul %14, %15, %cst_14 {dimension_numbers = #tpu.dot_dimension_numbers<[1], [0], [0], [1], [0, 0, 1, 1], [], []>} : vector<8x256xf32>, vector<256x128xf32>, vector<8x128xf32> -> vector<8x128xf32>
    %c0_15 = arith.constant 0 : index
    %c0_16 = arith.constant 0 : index
    %17 = vector.load %arg7[%c0_15, %c0_16] : memref<1x128xf32, #tpu.memory_space<vmem>>, vector<1x128xf32>
    %18 = vector.broadcast %17 : vector<1x128xf32> to vector<8x128xf32>
    %19 = arith.addf %16, %18 : vector<8x128xf32>
    %20 = vector.extract_strided_slice %19 {offsets = [0, 0], sizes = [8, 4], strides = [1, 1]} : vector<8x128xf32> to vector<8x4xf32>
    %c0_17 = arith.constant 0 : index
    %c0_18 = arith.constant 0 : index
    %21 = vector.load %arg8[%c0_17, %c0_18] : memref<8x4xf32, #tpu.memory_space<vmem>>, vector<8x4xf32>
    tpu.vector_store %arg8[%c0_17, %c0_18], %20 {strides = array<i32>} : memref<8x4xf32, #tpu.memory_space<vmem>>, vector<8x4xf32>,
    return
  }
  func.func @transform_0(%arg0: i32) -> (i32, i32) {
    %c0_i32 = arith.constant 0 : i32
    %c0_i32_0 = arith.constant 0 : i32
    return %arg0, %c0_i32 : i32, i32
  }
  func.func @transform_1(%arg0: i32) -> (i32, i32) {
    %c0_i32 = arith.constant 0 : i32
    %c0_i32_0 = arith.constant 0 : i32
    %c0_i32_1 = arith.constant 0 : i32
    return %c0_i32, %c0_i32_0 : i32, i32
  }
  func.func @transform_2(%arg0: i32) -> (i32, i32) {
    %c0_i32 = arith.constant 0 : i32
    %c0_i32_0 = arith.constant 0 : i32
    %c0_i32_1 = arith.constant 0 : i32
    return %c0_i32, %c0_i32_0 : i32, i32
  }
  func.func @transform_3(%arg0: i32) -> (i32, i32) {
    %c0_i32 = arith.constant 0 : i32
    %c0_i32_0 = arith.constant 0 : i32
    %c0_i32_1 = arith.constant 0 : i32
    return %c0_i32, %c0_i32_0 : i32, i32
  }
  func.func @transform_4(%arg0: i32) -> (i32, i32) {
    %c0_i32 = arith.constant 0 : i32
    %c0_i32_0 = arith.constant 0 : i32
    %c0_i32_1 = arith.constant 0 : i32
    return %c0_i32, %c0_i32_0 : i32, i32
  }
  func.func @transform_5(%arg0: i32) -> (i32, i32) {
    %c0_i32 = arith.constant 0 : i32
    %c0_i32_0 = arith.constant 0 : i32
    %c0_i32_1 = arith.constant 0 : i32
    return %c0_i32, %c0_i32_0 : i32, i32
  }
  func.func @transform_6(%arg0: i32) -> (i32, i32) {
    %c0_i32 = arith.constant 0 : i32
    %c0_i32_0 = arith.constant 0 : i32
    %c0_i32_1 = arith.constant 0 : i32
    return %c0_i32, %c0_i32_0 : i32, i32
  }
  func.func @transform_7(%arg0: i32) -> (i32, i32) {
    %c0_i32 = arith.constant 0 : i32
    %c0_i32_0 = arith.constant 0 : i32
    return %arg0, %c0_i32 : i32, i32
  }
}

</mosaic_0001>

<bundles_post_ra>
// kernel: qnetwork_forward.1
= control target key start
LH: loop header
LB: loop body
LE: loop exit
PB: predicated region body
PF: predicated region fallthrough
CT: control target
= control target key end

     0   :  { %12 = vsyncpa [#allocation3], 0  ;;  %s627_s0 = inlined_call_operand.vmem [shape: f32[8,8], index: 0, kind: input, shape index: {}]   ;;  %s628_s1 = inlined_call_operand.vmem [shape: f32[8,128], index: 1, kind: input, shape index: {}]   ;;  %s629_s2 = inlined_call_operand.vmem [shape: f32[1,128], index: 2, kind: input, shape index: {}]   ;;  %s630_s3 = inlined_call_operand.hbm [shape: f32[128,256], index: 3, kind: input, shape index: {}]   ;;  %s631_s4 = inlined_call_operand.vmem [shape: f32[1,256], index: 4, kind: input, shape index: {}]   ;;  %s632_s5 = inlined_call_operand.hbm [shape: f32[256,128], index: 5, kind: input, shape index: {}]   ;;  %s633_s6 = inlined_call_operand.vmem [shape: f32[1,128], index: 6, kind: input, shape index: {}]   ;;  %s634_s7 = inlined_call_operand.vmem [shape: f32[8,4], index: 7, kind: output, shape index: {}]  }
   0x1   :  { %13 = vsyncpa [#allocation5], 0  ;;  %s537_s24 = smov [#allocation2]   ;;  %s489_s28 = scalar_lea.hbm %s630_s3, 4096 }
   0x2   :  { %s25_s25 = sshll.u32 %s537_s24, 4  ;;  %p490_p0 = scmp.ne.s32.totalorder %s630_s3, %s489_s28  ;;  %s26_s25 = int_to_ptr.vmem [resolvable:$true] %s25_s25 }
   0x3   :  { %p493_p1 = scmp.lt.u32.totalorder %s489_s28, %s630_s3 }
   0x5   :  { %p495_p2 = pnand %p493_p1, %p490_p0 }
   0x7   :  { %498 = shalt.err (!%p495_p2)
}
   0x8   :  { %s499_s10 = scalar_lea.vmem %s26_s25, 4096  ;;  %p504_p4 = scmp.lt.s32.totalorder %s26_s25, %s26_s25 }
   0x9   :  { %p500_p3 = scmp.ne.s32.totalorder %s26_s25, %s499_s10  ;;  %p505_p5 = scmp.lt.s32.totalorder %s499_s10, %s499_s10 }
   0xb   :  { %p506_p6 = por %p505_p5, %p504_p4 }
   0xd   :  { %p507_p7 = pnand %p506_p6, %p500_p3 }
   0xf   :  { %510 = shalt.err (!%p507_p7)
}
  0x10   :  { %s538_s11 = smov 256   ;;  %s539_s12 = smov 16  }
  0x11   :  { %31 = dma.hbm_to_vmem [thread:$0]  %s630_s3, 4096, %s26_s25, [#allocation3], %s538_s11, %s538_s11, %s539_s12  }
  0x12   :  { %s540_s15 = smov [#allocation4]   ;;  %s511_s19 = scalar_lea.hbm %s632_s5, 4096 }
  0x13   :  { %s39_s16 = sshll.u32 %s540_s15, 4  ;;  %p512_p8 = scmp.ne.s32.totalorder %s632_s5, %s511_s19  ;;  %s40_s16 = int_to_ptr.vmem [resolvable:$true] %s39_s16 }
  0x14   :  { %p515_p9 = scmp.lt.u32.totalorder %s511_s19, %s632_s5 }
  0x16   :  { %p517_p10 = pnand %p515_p9, %p512_p8 }
  0x18   :  { %520 = shalt.err (!%p517_p10)
}
  0x19   :  { %s521_s24 = scalar_lea.vmem %s40_s16, 4096  ;;  %p526_p12 = scmp.lt.s32.totalorder %s40_s16, %s40_s16 }
  0x1a   :  { %p522_p11 = scmp.ne.s32.totalorder %s40_s16, %s521_s24  ;;  %p527_p13 = scmp.lt.s32.totalorder %s521_s24, %s521_s24 }
  0x1c   :  { %p528_p0 = por %p527_p13, %p526_p12 }
  0x1e   :  { %p529_p1 = pnand %p528_p0, %p522_p11 }
  0x20   :  { %532 = shalt.err (!%p529_p1)
}
  0x21   :  { %s541_s3 = smov 128   ;;  %s542_s25 = smov 8  }
  0x22   :  { %45 = dma.hbm_to_vmem [thread:$0]  %s632_s5, 4096, %s40_s16, [#allocation5], %s541_s3, %s541_s3, %s542_s25  }
  0x23   :  { %533 = dma.done.wait [#allocation3], 4096  }
  0x24   :  { %534 = vsyncadd [#allocation3], 4294963200 }
  0x25   :  { %535 = dma.done.wait [#allocation5], 4096  }
  0x26   :  { %536 = vsyncadd [#allocation5], 4294963200  ;;  %v543_v0 = vmov 0.0   ;;  %vm544_vm0 = vmmov 0   ;;  %vm63_vm1 = vcmask 64512   ;;  %v55_v1 = vld [vmem:[%s628_s1] sm:$0xff] }
  0x27   :  { %412 = vmatprep.subr.mxu0 %v543_v0  ;;  %414 = vmatprep.mubr.msk.f32.mxu0 %vm544_vm0, %v543_v0  ;;  %v54_v2 = vld [vmem:[%s627_s0] sm:$0xff]  ;;  %v139_v3 = vld [vmem:[#allocation2 + $0x8] sm:$0xff]  ;;  %v141_v4 = vld [vmem:[#allocation2 + $0x18] sm:$0xff]  ;;  %vm364_vm2 = vcmask 31744  }
  0x28   :  { %246 = vmatprep.mubr.f32.mxu1 %v543_v0  ;;  %413 = vmatpush3.msra.mxu0 %v55_v1  ;;  %v138_v5 = vld [vmem:[#allocation2] sm:$0xff]  ;;  %v140_v6 = vld [vmem:[#allocation2 + $0x10] sm:$0xff]  ;;  %v417_v7 = vpack.c.bf16 %v141_v4, %v139_v3  ;;  %v143_v9 = vld [vmem:[#allocation2 + $0x28] sm:$0xff] }
  0x29   :  { %415 = vmatmul.mubr.msk.f32.vlgmr.msra.gmra.mrb[0].mxu0 %vm63_vm1, %v54_v2  ;;  %v419_v8 = vpack.c.bf16 %v140_v6, %v138_v5  ;;  %v145_v10 = vld [vmem:[#allocation2 + $0x38] sm:$0xff]  ;;  %v142_v11 = vld [vmem:[#allocation2 + $0x20] sm:$0xff]  ;;  %v144_v13 = vld [vmem:[#allocation2 + $0x30] sm:$0xff] }
  0x2a   :  { %v421_v12 = vpack.c.bf16 %v145_v10, %v143_v9  ;;  %v147_v14 = vld [vmem:[#allocation2 + $0x48] sm:$0xff]  ;;  %v149_v15 = vld [vmem:[#allocation2 + $0x58] sm:$0xff]  ;;  %418 = vmatprep.subr.bf16.mxu1 %v417_v7  ;;  %v423_v16 = vpack.c.bf16 %v144_v13, %v142_v11  ;;  %v146_v18 = vld [vmem:[#allocation2 + $0x40] sm:$0xff] }
  0x2b   :  { %420 = vmatpush1.bf16.msra.mxu1 %v419_v8  ;;  %v425_v17 = vpack.c.bf16 %v149_v15, %v147_v14  ;;  %v148_v19 = vld [vmem:[#allocation2 + $0x50] sm:$0xff]  ;;  %v151_v20 = vld [vmem:[#allocation2 + $0x68] sm:$0xff]  ;;  %v153_v21 = vld [vmem:[#allocation2 + $0x78] sm:$0xff] }
  0x2c   :  { %422 = vmatprep.subr.bf16.mxu1 %v421_v12  ;;  %v427_v22 = vpack.c.bf16 %v148_v19, %v146_v18  ;;  %v429_v23 = vpack.c.bf16 %v153_v21, %v151_v20  ;;  %v150_v24 = vld [vmem:[#allocation2 + $0x60] sm:$0xff]  ;;  %v152_v25 = vld [vmem:[#allocation2 + $0x70] sm:$0xff]  ;;  %v155_v26 = vld [vmem:[#allocation2 + $0x88] sm:$0xff] }
  0x2d   :  { %v157_v27 = vld [vmem:[#allocation2 + $0x98] sm:$0xff]  ;;  %v431_v28 = vpack.c.bf16 %v152_v25, %v150_v24  ;;  %v154_v30 = vld [vmem:[#allocation2 + $0x80] sm:$0xff]  ;;  %v156_v31 = vld [vmem:[#allocation2 + $0x90] sm:$0xff] }
  0x2e   :  { %v433_v29 = vpack.c.bf16 %v157_v27, %v155_v26  ;;  %v159_v32 = vld [vmem:[#allocation2 + $0xa8] sm:$0xff]  ;;  %v161_v33 = vld [vmem:[#allocation2 + $0xb8] sm:$0xff]  ;;  %v435_v34 = vpack.c.bf16 %v156_v31, %v154_v30  ;;  %v158_v36 = vld [vmem:[#allocation2 + $0xa0] sm:$0xff] }
  0x2f   :  { %424 = vmatpush1.bf16.msra.mxu1 %v423_v16  ;;  %v437_v35 = vpack.c.bf16 %v161_v33, %v159_v32  ;;  %v160_v37 = vld [vmem:[#allocation2 + $0xb0] sm:$0xff]  ;;  %v163_v38 = vld [vmem:[#allocation2 + $0xc8] sm:$0xff]  ;;  %v165_v39 = vld [vmem:[#allocation2 + $0xd8] sm:$0xff] }
  0x30   :  { %426 = vmatprep.subr.bf16.mxu1 %v425_v17  ;;  %v439_v40 = vpack.c.bf16 %v160_v37, %v158_v36  ;;  %v441_v41 = vpack.c.bf16 %v165_v39, %v163_v38  ;;  %v162_v42 = vld [vmem:[#allocation2 + $0xc0] sm:$0xff]  ;;  %v164_v43 = vld [vmem:[#allocation2 + $0xd0] sm:$0xff]  ;;  %v167_v45 = vld [vmem:[#allocation2 + $0xe8] sm:$0xff] }
  0x31   :  { %v443_v44 = vpack.c.bf16 %v164_v43, %v162_v42  ;;  %v169_v46 = vld [vmem:[#allocation2 + $0xf8] sm:$0xff]  ;;  %v166_v48 = vld [vmem:[#allocation2 + $0xe0] sm:$0xff]  ;;  %v168_v49 = vld [vmem:[#allocation2 + $0xf0] sm:$0xff] }
  0x32   :  { %v445_v47 = vpack.c.bf16 %v169_v46, %v167_v45  ;;  %v447_v50 = vpack.c.bf16 %v168_v49, %v166_v48  ;;  %v271_v51 = vld [vmem:[#allocation4 + $0x80] sm:$0xff]  ;;  %v272_v52 = vld [vmem:[#allocation4 + $0x88] sm:$0xff]  ;;  %v273_v56 = vld [vmem:[#allocation4 + $0x90] sm:$0xff] }
  0x33   :  { %428 = vmatpush1.bf16.msra.mxu1 %v427_v22  ;;  %v255_v53 = vld [vmem:[#allocation4] sm:$0xff]  ;;  %v449_v54 = vpack.c.bf16 %v272_v52, %v271_v51  ;;  %v256_v55 = vld [vmem:[#allocation4 + $0x8] sm:$0xff]  ;;  %v274_v57 = vld [vmem:[#allocation4 + $0x98] sm:$0xff] }
  0x34   :  { %430 = vmatprep.subr.bf16.mxu1 %v429_v23  ;;  %v451_v58 = vpack.c.bf16 %v256_v55, %v255_v53  ;;  %v453_v59 = vpack.c.bf16 %v274_v57, %v273_v56  ;;  %v257_v60 = vld [vmem:[#allocation4 + $0x10] sm:$0xff]  ;;  %v258_v61 = vld [vmem:[#allocation4 + $0x18] sm:$0xff]  ;;  %v275_v62 = vld [vmem:[#allocation4 + $0xa0] sm:$0xff] }
  0x35   :  { %450 = vmatprep.subr.bf16.mxu0 %v449_v54  ;;  %v276_v63 = vld [vmem:[#allocation4 + $0xa8] sm:$0xff]  ;;  %v455_v0 = vpack.c.bf16 %v258_v61, %v257_v60  ;;  %v259_v2 = vld [vmem:[#allocation4 + $0x20] sm:$0xff]  ;;  %v277_v4 = vld [vmem:[#allocation4 + $0xb0] sm:$0xff] }
  0x36   :  { %452 = vmatpush3.bf16.msra.mxu0 %v451_v58  ;;  %v457_v1 = vpack.c.bf16 %v276_v63, %v275_v62  ;;  %v260_v3 = vld [vmem:[#allocation4 + $0x28] sm:$0xff]  ;;  %v278_v5 = vld [vmem:[#allocation4 + $0xb8] sm:$0xff]  ;;  %v261_v8 = vld [vmem:[#allocation4 + $0x30] sm:$0xff] }
  0x37   :  { %432 = vmatpush1.bf16.msra.mxu1 %v431_v28  ;;  %454 = vmatprep.subr.bf16.mxu0 %v453_v59  ;;  %v459_v6 = vpack.c.bf16 %v260_v3, %v259_v2  ;;  %v461_v7 = vpack.c.bf16 %v278_v5, %v277_v4  ;;  %v262_v9 = vld [vmem:[#allocation4 + $0x38] sm:$0xff]  ;;  %v279_v10 = vld [vmem:[#allocation4 + $0xc0] sm:$0xff]  ;;  %v280_v11 = vld [vmem:[#allocation4 + $0xc8] sm:$0xff] }
  0x38   :  { %434 = vmatprep.subr.bf16.mxu1 %v433_v29  ;;  %v463_v12 = vpack.c.bf16 %v262_v9, %v261_v8  ;;  %v465_v13 = vpack.c.bf16 %v280_v11, %v279_v10  ;;  %v263_v14 = vld [vmem:[#allocation4 + $0x40] sm:$0xff]  ;;  %v264_v15 = vld [vmem:[#allocation4 + $0x48] sm:$0xff]  ;;  %v281_v16 = vld [vmem:[#allocation4 + $0xd0] sm:$0xff] }
  0x39   :  { %v282_v17 = vld [vmem:[#allocation4 + $0xd8] sm:$0xff]  ;;  %v467_v18 = vpack.c.bf16 %v264_v15, %v263_v14  ;;  %v265_v20 = vld [vmem:[#allocation4 + $0x50] sm:$0xff]  ;;  %v283_v22 = vld [vmem:[#allocation4 + $0xe0] sm:$0xff] }
  0x3a   :  { %456 = vmatpush3.bf16.msra.mxu0 %v455_v0  ;;  %v469_v19 = vpack.c.bf16 %v282_v17, %v281_v16  ;;  %v266_v21 = vld [vmem:[#allocation4 + $0x58] sm:$0xff]  ;;  %v284_v23 = vld [vmem:[#allocation4 + $0xe8] sm:$0xff]  ;;  %v372_v26 = vld [vmem:[%s629_s2] ss:$0 sm:$0xff] }
  0x3b   :  { %436 = vmatpush1.bf16.msra.mxu1 %v435_v34  ;;  %458 = vmatprep.subr.bf16.mxu0 %v457_v1  ;;  %v471_v24 = vpack.c.bf16 %v266_v21, %v265_v20  ;;  %v473_v25 = vpack.c.bf16 %v284_v23, %v283_v22  ;;  %v267_v31 = vld [vmem:[#allocation4 + $0x60] sm:$0xff]  ;;  %v268_v32 = vld [vmem:[#allocation4 + $0x68] sm:$0xff]  ;;  %v285_v34 = vld [vmem:[#allocation4 + $0xf0] sm:$0xff] }
  0x3c   :  { %438 = vmatprep.subr.bf16.mxu1 %v437_v35  ;;  %v475_v33 = vpack.c.bf16 %v268_v32, %v267_v31  ;;  %v286_v35 = vld [vmem:[#allocation4 + $0xf8] sm:$0xff]  ;;  %v269_v37 = vld [vmem:[#allocation4 + $0x70] sm:$0xff]  ;;  %v170_v43 = vld [vmem:[%s631_s4] sm:$0x3] }
  0x3d   :  { %v477_v36 = vpack.c.bf16 %v286_v35, %v285_v34  ;;  %v270_v38 = vld [vmem:[#allocation4 + $0x78] sm:$0xff]  ;;  %v374_v54 = vld [vmem:[%s633_s6] ss:$0 sm:$0xff] }
  0x3e   :  { %460 = vmatpush3.bf16.msra.mxu0 %v459_v6  ;;  %v479_v39 = vpack.c.bf16 %v270_v38, %v269_v37 }
  0x3f   :  { %440 = vmatpush1.bf16.msra.mxu1 %v439_v40  ;;  %462 = vmatprep.subr.bf16.mxu0 %v461_v7  ;;  %v172_v40 = vlaneseq }
  0x40   :  { %442 = vmatprep.subr.bf16.mxu1 %v441_v41 }
  0x41   :  { %v173_v41 = vshrl.u32 %v172_v40, 7 }
  0x42   :  { %464 = vmatpush3.bf16.msra.mxu0 %v463_v12 }
  0x43   :  { %444 = vmatpush1.bf16.msra.mxu1 %v443_v44  ;;  %466 = vmatprep.subr.bf16.mxu0 %v465_v13  ;;  %v174_v42 = vsub.s32 0, %v173_v41  ;;  %v178_v44 = vsub.s32 1, %v173_v41 }
  0x44   :  { %446 = vmatprep.subr.bf16.mxu1 %v445_v47 }
  0x45   :  { %v175_v45 = vrot.slane %v170_v43, %v174_v42  ;;  %v179_v46 = vrot.slane %v170_v43, %v178_v44 }
  0x46   :  { %468 = vmatpush3.bf16.msra.mxu0 %v467_v18 }
  0x47   :  { %448 = vmatpush1.bf16.msra.mxu1 %v447_v50  ;;  %470 = vmatprep.subr.bf16.mxu0 %v469_v19 }
  0x4a   :  { %472 = vmatpush3.bf16.msra.mxu0 %v471_v24 }
  0x4b   :  { %474 = vmatprep.subr.bf16.mxu0 %v473_v25 }
  0x4e   :  { %476 = vmatpush3.bf16.msra.mxu0 %v475_v33 }
  0x4f   :  { %478 = vmatprep.subr.bf16.mxu0 %v477_v36 }
  0x52   :  { %480 = vmatpush3.bf16.msra.mxu0 %v479_v39 }
  0xfc   :  { %v133_v27 = vpop.f32.mrb[0].mxu0 }
  0xfd   :  { %v134_v28 = vadd.f32 %v372_v26, %v133_v27  ;;  %v416_v29 = vpop.f32.mrb[1].mxu0 }
  0xff   :  { %v137_v30 = vmax.f32 %v134_v28, 0.0 }
 0x101   :  { %247 = vmatmul.mubr.f32.vlgmr.msra.gmra.mrb[0].mxu1 %v137_v30 }
 0x1d4   :  { %v248_v47 = vpop.f32.mrb[0].mxu1 }
 0x1d5   :  { %v249_v48 = vadd.f32 %v248_v47, %v175_v45  ;;  %v250_v49 = vpop.f32.mrb[1].mxu1 }
 0x1d6   :  { %v251_v50 = vadd.f32 %v250_v49, %v179_v46 }
 0x1d7   :  { %v253_v52 = vmax.f32 %v249_v48, 0.0 }
 0x1d8   :  { %v254_v51 = vmax.f32 %v251_v50, 0.0 }
 0x1da   :  { %358 = vmatprep.mubr.f32.mxu0 %v254_v51 }
 0x1db   :  { %359 = vmatmul.mubr.f32.vlgmr.msra.gmra.mrb[2].mxu0 %v253_v52 }
 0x2ae   :  { %v409_v53 = vpop.f32.mrb[2].mxu0 }
 0x2af   :  { %v410_v55 = vpop.f32.mrb[3].mxu0 }
 0x2b0   :  { %v411_v56 = vadd.f32 %v410_v55, %v409_v53 }
 0x2b2   :  { %v361_v57 = vadd.f32 %v411_v56, %v374_v54 }
 0x2b4   :  { %365 = vst.msk [vmem:[%s634_s7] sm:$0xff] %vm364_vm2, %v361_v57 }
 0x2b5   :  { %370 = vsyncpa [#allocation3], 1 }
 0x2b6   :  { %371 = vsyncpa [#allocation5], 1 }

</bundles_post_ra>
